<compile_context>
chip_gen: v5e
topology: v5e:2x2
jax: 0.10.0
libtpu: 0.0.40
codegen_flags: <defaults>
</compile_context>

<pallas_src>
import jax
import jax.numpy as jnp
from jax.experimental import pallas as pl
from jax.experimental.pallas import tpu as pltpu


def _mlp_kernel(x_ref, w1_ref, b1_ref, w2_ref, b2_ref, w3_ref, b3_ref, o_ref):
    # x arrives as f32; cast to bf16 in VMEM (no extra wrapper HBM pass).
    x = x_ref[...].astype(jnp.bfloat16)

    # fc1 + ReLU  (MXU, bf16 feeds, f32 accumulation; bias/ReLU in f32).
    h1 = jnp.dot(x, w1_ref[...], preferred_element_type=jnp.float32) + b1_ref[...]
    h1 = jnp.maximum(h1, 0.0).astype(jnp.bfloat16)

    # fc2 + ReLU; keep the activation in f32 (fc5 below stays off the MXU).
    h2 = jnp.dot(h1, w2_ref[...], preferred_element_type=jnp.float32) + b2_ref[...]
    h2 = jnp.maximum(h2, 0.0)

    # fc5 on VPU (elementwise mul) + XLU (cross-lane reduce): avoids an M=1
    # MXU matmul / h2 transpose.  Result is a (TB, 1) f32 column stored
    # directly into the (B, 1) output — no relayout after the kernel.
    out = jnp.sum(h2 * w3_ref[...], axis=-1, keepdims=True) + b3_ref[0]
    o_ref[...] = out.astype(o_ref.dtype)


def _round_up(n, m):
    return ((n + m - 1) // m) * m


def credit_card_mlp(x, params, *, block_b=4096):
    """Fused CreditCardMLP forward.

    x: (B, 64) float32.  params: dict of (in, out)-layout weights / biases.
    Returns (B, 1) float32, matching the PyTorch module.
    """
    B, fin = x.shape
    assert fin == 64, f"expected 64 input features, got {fin}"

    # Large batch tile to amortize per-grid-step overhead, clipped to the
    # (8-aligned) batch so small batches don't over-allocate VMEM.
    TB = max(8, min(block_b, _round_up(B, 8)))
    G = pl.cdiv(B, TB)  # ragged last block handled by Pallas (rows independent)

    x = x.astype(jnp.float32)
    w1 = params["w1"].astype(jnp.bfloat16)                  # (64, 128)
    w2 = params["w2"].astype(jnp.bfloat16)                  # (128, 128)
    w3 = params["w3"].astype(jnp.float32).reshape(1, 128)   # (1, 128) f32 row
    b1 = params["b1"].astype(jnp.float32).reshape(1, 128)
    b2 = params["b2"].astype(jnp.float32).reshape(1, 128)
    b3 = params["b3"].astype(jnp.float32).reshape(1)        # scalar via SMEM

    flops = 2 * B * (64 * 128 + 128 * 128 + 128)
    bytes_accessed = (
        B * 64 * 4                               # streamed f32 x
        + (64 * 128 + 128 * 128) * 2             # bf16 matmul weights (resident)
        + 128 * 4 + 2 * 128 * 4 + 4              # f32 w3 row + biases
        + B * 4                                  # f32 output column
    )

    return pl.pallas_call(
        _mlp_kernel,
        out_shape=jax.ShapeDtypeStruct((B, 1), jnp.float32),
        grid=(G,),
        in_specs=[
            pl.BlockSpec((TB, 64), lambda i: (i, 0)),            # x (streamed)
            pl.BlockSpec((64, 128), lambda i: (0, 0)),           # w1 (resident)
            pl.BlockSpec((1, 128), lambda i: (0, 0)),            # b1
            pl.BlockSpec((128, 128), lambda i: (0, 0)),          # w2
            pl.BlockSpec((1, 128), lambda i: (0, 0)),            # b2
            pl.BlockSpec((1, 128), lambda i: (0, 0)),            # w3 row
            pl.BlockSpec(memory_space=pltpu.MemorySpace.SMEM),   # b3 scalar
        ],
        out_specs=pl.BlockSpec((TB, 1), lambda i: (i, 0)),
        compiler_params=pltpu.CompilerParams(
            dimension_semantics=("parallel",),
        ),
        cost_estimate=pl.CostEstimate(
            flops=flops, transcendentals=0, bytes_accessed=bytes_accessed),
    )(x, w1, b1, w2, b2, w3, b3)


def init_params(key):
    """PyTorch nn.Linear-like init (U(-1/sqrt(in), 1/sqrt(in))), weights stored
    as (in_features, out_features)."""
    def linear(key, fan_in, fan_out):
        kw, kb = jax.random.split(key)
        bound = 1.0 / jnp.sqrt(fan_in)
        w = jax.random.uniform(kw, (fan_in, fan_out), jnp.float32, -bound, bound)
        b = jax.random.uniform(kb, (1, fan_out), jnp.float32, -bound, bound)
        return w, b

    k1, k2, k3 = jax.random.split(key, 3)
    w1, b1 = linear(k1, 64, 128)
    w2, b2 = linear(k2, 128, 128)
    w3, b3 = linear(k3, 128, 1)
    return {"w1": w1, "b1": b1, "w2": w2, "b2": b2, "w3": w3, "b3": b3}


def _reference(x, p):
    """Pure-JAX reference mirroring the kernel numerics: bf16 MXU feeds with
    f32 accumulation on fc1/fc2, exact f32 fc5.  (Differs from a pure-f32
    PyTorch forward by O(1e-2) relative error due to the bf16 feeds.)"""
    bf = jnp.bfloat16
    xb = x.astype(bf)
    h1 = jnp.maximum(
        jnp.dot(xb, p["w1"].astype(bf), preferred_element_type=jnp.float32)
        + p["b1"], 0.0).astype(bf)
    h2 = jnp.maximum(
        jnp.dot(h1, p["w2"].astype(bf), preferred_element_type=jnp.float32)
        + p["b2"], 0.0)
    w3_row = p["w3"].reshape(1, 128)
    return jnp.sum(h2 * w3_row, axis=-1, keepdims=True) + p["b3"].reshape(1)


if __name__ == "__main__":
    key = jax.random.PRNGKey(0)
    kx, kp = jax.random.split(key)
    params = init_params(kp)

    # Small single-tile check (TB clipped to the batch size).
    B = 8
    x = jax.random.normal(kx, (B, 64), dtype=jnp.float32)
    out = jax.block_until_ready(credit_card_mlp(x, params))
    ref = _reference(x, params)
    assert out.shape == (B, 1)
    assert jnp.allclose(out, ref, atol=1e-3, rtol=1e-3)

    # Multi-tile + ragged last block (1000 = 3*256 + 232), no wrapper padding.
    B2 = 1000
    x2 = jax.random.normal(jax.random.PRNGKey(1), (B2, 64), dtype=jnp.float32)
    out2 = jax.block_until_ready(credit_card_mlp(x2, params, block_b=256))
    ref2 = _reference(x2, params)
    assert out2.shape == (B2, 1)
    assert jnp.allclose(out2, ref2, atol=1e-3, rtol=1e-3)

    print("KERNEL_OK")
</pallas_src>

<mosaic_0001>
module attributes {stable_mosaic.version = 11 : i64} {
  func.func @_mlp_kernel(%arg0: i32, %arg1: memref<8x64xf32, #tpu.memory_space<vmem>>, %arg2: memref<64x128xbf16, #tpu.memory_space<vmem>>, %arg3: memref<1x128xf32, #tpu.memory_space<vmem>>, %arg4: memref<128x128xbf16, #tpu.memory_space<vmem>>, %arg5: memref<1x128xf32, #tpu.memory_space<vmem>>, %arg6: memref<1x128xf32, #tpu.memory_space<vmem>>, %arg7: memref<1xf32, #tpu.memory_space<smem>>, %arg8: memref<8x1xf32, #tpu.memory_space<vmem>>) attributes {dimension_semantics = [#tpu.dimension_semantics<parallel>], iteration_bounds = array<i64: 1>, scalar_prefetch = 0 : i64, scratch_operands = 0 : i64, tpu.core_type = #tpu.core_type<tc>, window_params = [{transform_indices = @transform_0, window_bounds = array<i64: 8, 64>}, {pipeline_mode = #tpu.pipeline_mode<synchronous>, transform_indices = @transform_1, window_bounds = array<i64: 64, 128>}, {pipeline_mode = #tpu.pipeline_mode<synchronous>, transform_indices = @transform_2, window_bounds = array<i64: 1, 128>}, {pipeline_mode = #tpu.pipeline_mode<synchronous>, transform_indices = @transform_3, window_bounds = array<i64: 128, 128>}, {pipeline_mode = #tpu.pipeline_mode<synchronous>, transform_indices = @transform_4, window_bounds = array<i64: 1, 128>}, {pipeline_mode = #tpu.pipeline_mode<synchronous>, transform_indices = @transform_5, window_bounds = array<i64: 1, 128>}, {transform_indices = @transform_6, window_bounds = array<i64: 1>}, {transform_indices = @transform_7, window_bounds = array<i64: 8, 1>}]} {
    %c0 = arith.constant 0 : index
    %c0_0 = arith.constant 0 : index
    %0 = vector.load %arg1[%c0, %c0_0] : memref<8x64xf32, #tpu.memory_space<vmem>>, vector<8x64xf32>
    %1 = arith.truncf %0 : vector<8x64xf32> to vector<8x64xbf16>
    %c0_1 = arith.constant 0 : index
    %c0_2 = arith.constant 0 : index
    %2 = vector.load %arg2[%c0_1, %c0_2] : memref<64x128xbf16, #tpu.memory_space<vmem>>, vector<64x128xbf16>
    %cst = arith.constant dense<0.000000e+00> : vector<8x128xf32>
    %3 = tpu.matmul %1, %2, %cst {dimension_numbers = #tpu.dot_dimension_numbers<[1], [0], [0], [1], [0, 0, 1, 1], [], []>} : vector<8x64xbf16>, vector<64x128xbf16>, vector<8x128xf32> -> vector<8x128xf32>
    %c0_3 = arith.constant 0 : index
    %c0_4 = arith.constant 0 : index
    %4 = vector.load %arg3[%c0_3, %c0_4] : memref<1x128xf32, #tpu.memory_space<vmem>>, vector<1x128xf32>
    %5 = vector.broadcast %4 : vector<1x128xf32> to vector<8x128xf32>
    %6 = arith.addf %3, %5 : vector<8x128xf32>
    %cst_5 = arith.constant 0.000000e+00 : f32
    %7 = vector.broadcast %cst_5 : f32 to vector<8x128xf32>
    %8 = arith.maximumf %6, %7 : vector<8x128xf32>
    %9 = arith.truncf %8 : vector<8x128xf32> to vector<8x128xbf16>
    %c0_6 = arith.constant 0 : index
    %c0_7 = arith.constant 0 : index
    %10 = vector.load %arg4[%c0_6, %c0_7] : memref<128x128xbf16, #tpu.memory_space<vmem>>, vector<128x128xbf16>
    %cst_8 = arith.constant dense<0.000000e+00> : vector<8x128xf32>
    %11 = tpu.matmul %9, %10, %cst_8 {dimension_numbers = #tpu.dot_dimension_numbers<[1], [0], [0], [1], [0, 0, 1, 1], [], []>} : vector<8x128xbf16>, vector<128x128xbf16>, vector<8x128xf32> -> vector<8x128xf32>
    %c0_9 = arith.constant 0 : index
    %c0_10 = arith.constant 0 : index
    %12 = vector.load %arg5[%c0_9, %c0_10] : memref<1x128xf32, #tpu.memory_space<vmem>>, vector<1x128xf32>
    %13 = vector.broadcast %12 : vector<1x128xf32> to vector<8x128xf32>
    %14 = arith.addf %11, %13 : vector<8x128xf32>
    %cst_11 = arith.constant 0.000000e+00 : f32
    %15 = vector.broadcast %cst_11 : f32 to vector<8x128xf32>
    %16 = arith.maximumf %14, %15 : vector<8x128xf32>
    %c0_12 = arith.constant 0 : index
    %c0_13 = arith.constant 0 : index
    %17 = vector.load %arg6[%c0_12, %c0_13] : memref<1x128xf32, #tpu.memory_space<vmem>>, vector<1x128xf32>
    %18 = vector.broadcast %17 : vector<1x128xf32> to vector<8x128xf32>
    %19 = arith.mulf %16, %18 : vector<8x128xf32>
    %cst_14 = arith.constant dense<0.000000e+00> : vector<8xf32>
    %20 = vector.multi_reduction <add>, %19, %cst_14 [1] : vector<8x128xf32> to vector<8xf32>
    %21 = vector.shape_cast %20 : vector<8xf32> to vector<8x1xf32>
    %c0_15 = arith.constant 0 : index
    %22 = memref.load %arg7[%c0_15] : memref<1xf32, #tpu.memory_space<smem>>
    %23 = vector.broadcast %22 : f32 to vector<8x1xf32>
    %24 = arith.addf %21, %23 : vector<8x1xf32>
    %c0_16 = arith.constant 0 : index
    %c0_17 = arith.constant 0 : index
    %25 = vector.load %arg8[%c0_16, %c0_17] : memref<8x1xf32, #tpu.memory_space<vmem>>, vector<8x1xf32>
    tpu.vector_store %arg8[%c0_16, %c0_17], %24 {strides = array<i32>} : memref<8x1xf32, #tpu.memory_space<vmem>>, vector<8x1xf32>,
    return
  }
  func.func @transform_0(%arg0: i32) -> (i32, i32) {
    %c0_i32 = arith.constant 0 : i32
    %c0_i32_0 = arith.constant 0 : i32
    return %arg0, %c0_i32 : i32, i32
  }
  func.func @transform_1(%arg0: i32) -> (i32, i32) {
    %c0_i32 = arith.constant 0 : i32
    %c0_i32_0 = arith.constant 0 : i32
    %c0_i32_1 = arith.constant 0 : i32
    return %c0_i32, %c0_i32_0 : i32, i32
  }
  func.func @transform_2(%arg0: i32) -> (i32, i32) {
    %c0_i32 = arith.constant 0 : i32
    %c0_i32_0 = arith.constant 0 : i32
    %c0_i32_1 = arith.constant 0 : i32
    return %c0_i32, %c0_i32_0 : i32, i32
  }
  func.func @transform_3(%arg0: i32) -> (i32, i32) {
    %c0_i32 = arith.constant 0 : i32
    %c0_i32_0 = arith.constant 0 : i32
    %c0_i32_1 = arith.constant 0 : i32
    return %c0_i32, %c0_i32_0 : i32, i32
  }
  func.func @transform_4(%arg0: i32) -> (i32, i32) {
    %c0_i32 = arith.constant 0 : i32
    %c0_i32_0 = arith.constant 0 : i32
    %c0_i32_1 = arith.constant 0 : i32
    return %c0_i32, %c0_i32_0 : i32, i32
  }
  func.func @transform_5(%arg0: i32) -> (i32, i32) {
    %c0_i32 = arith.constant 0 : i32
    %c0_i32_0 = arith.constant 0 : i32
    %c0_i32_1 = arith.constant 0 : i32
    return %c0_i32, %c0_i32_0 : i32, i32
  }
  func.func @transform_6(%arg0: i32) -> i32 {
    %c0_i32 = arith.constant 0 : i32
    %c0_i32_0 = arith.constant 0 : i32
    return %c0_i32 : i32
  }
  func.func @transform_7(%arg0: i32) -> (i32, i32) {
    %c0_i32 = arith.constant 0 : i32
    %c0_i32_0 = arith.constant 0 : i32
    return %arg0, %c0_i32 : i32, i32
  }
}

</mosaic_0001>

<bundles_post_ra>
// kernel: tpu_custom_call.1
= control target key start
LH: loop header
LB: loop body
LE: loop exit
PB: predicated region body
PF: predicated region fallthrough
CT: control target
= control target key end

     0   :  { %13 = vsyncpa [#allocation4], 0  ;;  %s444_s0 = inlined_call_operand.hbm [shape: f32[8,64], index: 0, kind: input, shape index: {}]   ;;  %s445_s1 = inlined_call_operand.hbm [shape: bf16[64,128], index: 1, kind: input, shape index: {}]   ;;  %s446_s2 = inlined_call_operand.vmem [shape: f32[1,128], index: 2, kind: input, shape index: {}]   ;;  %s447_s3 = inlined_call_operand.hbm [shape: bf16[128,128], index: 3, kind: input, shape index: {}]   ;;  %s448_s4 = inlined_call_operand.vmem [shape: f32[1,128], index: 4, kind: input, shape index: {}]   ;;  %s449_s5 = inlined_call_operand.vmem [shape: f32[1,128], index: 5, kind: input, shape index: {}]   ;;  %s450_s6 = inlined_call_operand.<no memory space> [shape: f32[1], index: 6, kind: input, shape index: {}]   ;;  %s451_s7 = inlined_call_operand.vmem [shape: f32[8,1], index: 7, kind: output, shape index: {}]  }
   0x1   :  { %14 = vsyncpa [#allocation6], 0  ;;  %s30_s26 = sshll.u32 %s445_s1, 4  ;;  %s375_s27 = smov [#allocation5]   ;;  %s31_s26 = int_to_ptr.hbm [resolvable:$true] %s30_s26 }
   0x2   :  { %s32_s28 = sshll.u32 %s375_s27, 4  ;;  %s20_s8 = sshll.u32 %s444_s0, 4  ;;  %s33_s28 = int_to_ptr.vmem [resolvable:$true] %s32_s28  ;;  %s21_s8 = int_to_ptr.hbm [resolvable:$true] %s20_s8 }
   0x3   :  { %s376_s9 = smov 64   ;;  %s377_s10 = smov 4  }
   0x4   :  { %38 = dma.hbm_to_vmem [thread:$0]  %s31_s26, 512, %s33_s28, [#allocation6], %s376_s9, %s376_s9, %s377_s10  }
   0x5   :  { %s378_s11 = smov [#allocation3]   ;;  %s45_s15 = sshll.u32 %s447_s3, 4  ;;  %s46_s15 = int_to_ptr.hbm [resolvable:$true] %s45_s15 }
   0x6   :  { %s22_s12 = sshll.u32 %s378_s11, 4  ;;  %s379_s1 = smov [#allocation7]   ;;  %s23_s12 = int_to_ptr.vmem [resolvable:$true] %s22_s12 }
   0x7   :  { %25 = dma.hbm_to_vmem [thread:$0]  %s21_s8, 128, %s23_s12, [#allocation4]  }
   0x8   :  { %s47_s16 = sshll.u32 %s379_s1, 4  ;;  %s48_s16 = int_to_ptr.vmem [resolvable:$true] %s47_s16 }
   0x9   :  { %53 = dma.hbm_to_vmem [thread:$0]  %s46_s15, 1024, %s48_s16, [#allocation6], %s376_s9, %s376_s9, %s377_s10  }
   0xa   :  { %371 = dma.done.wait [#allocation4], 128  }
   0xb   :  { %372 = vsyncadd [#allocation4], 4294967168 }
   0xc   :  { %373 = dma.done.wait [#allocation6], 1536  }
   0xd   :  { %374 = vsyncadd [#allocation6], 4294965760  ;;  %v282_v0 = vld [vmem:[#allocation5 + $0x18] sm:$0xff]  ;;  %v281_v2 = vld [vmem:[#allocation5 + $0x10] sm:$0xff]  ;;  %vm111_vm0 = vcmask 523264   ;;  %v220_v27 = vstv %s450_s6  ;;  %vm222_vm1 = vcmask 7168  }
   0xe   :  { %v290_v1 = vld [vmem:[#allocation7 + $0x38] sm:$0xff]  ;;  %119 = vmatpush.bf16.msra.mxu0 %v282_v0  ;;  %v289_v3 = vld [vmem:[#allocation7 + $0x30] sm:$0xff]  ;;  %v280_v4 = vld [vmem:[#allocation5 + $0x8] sm:$0xff] }
   0xf   :  { %198 = vmatpush.bf16.msra.mxu1 %v290_v1  ;;  %v288_v5 = vld [vmem:[#allocation7 + $0x28] sm:$0xff]  ;;  %v279_v6 = vld [vmem:[#allocation5] sm:$0xff]  ;;  %v73_v7 = vld [vmem:[#allocation3] sm:$0xff] }
  0x10   :  { %v287_v8 = vld [vmem:[#allocation7 + $0x20] sm:$0xff]  ;;  %v74_v9 = vpack.c.bf16 %v73_v7, %v73_v7  ;;  %v286_v10 = vld [vmem:[#allocation7 + $0x18] sm:$0xff]  ;;  %v285_v11 = vld [vmem:[#allocation7 + $0x10] sm:$0xff] }
  0x11   :  { %v284_v12 = vld [vmem:[#allocation7 + $0x8] sm:$0xff]  ;;  %v283_v13 = vld [vmem:[#allocation7] sm:$0xff]  ;;  %v296_v14 = vld [vmem:[%s446_s2] ss:$0 sm:$0xff] }
  0x12   :  { %120 = vmatpush.bf16.msra.mxu0 %v281_v2  ;;  %v297_v20 = vld [vmem:[%s448_s4] ss:$0 sm:$0xff] }
  0x13   :  { %199 = vmatpush.bf16.msra.mxu1 %v289_v3  ;;  %v298_v23 = vld [vmem:[%s449_s5] ss:$0 sm:$0xff] }
  0x16   :  { %121 = vmatpush.bf16.msra.mxu0 %v280_v4 }
  0x17   :  { %200 = vmatpush.bf16.msra.mxu1 %v288_v5 }
  0x1a   :  { %122 = vmatpush.bf16.msra.mxu0 %v279_v6 }
  0x1b   :  { %201 = vmatpush.bf16.msra.mxu1 %v287_v8 }
  0x1d   :  { %246 = vmatmul.msk.bf16.vlgmr.msra.gmra.mxu0 %vm111_vm0, %v74_v9 }
  0x1f   :  { %202 = vmatpush.bf16.msra.mxu1 %v286_v10 }
  0x23   :  { %203 = vmatpush.bf16.msra.mxu1 %v285_v11 }
  0x27   :  { %204 = vmatpush.bf16.msra.mxu1 %v284_v12 }
  0x2b   :  { %205 = vmatpush.bf16.msra.mxu1 %v283_v13 }
  0x9a   :  { %v124_v15 = vpop.f32.mrf.mxu0 }
  0x9b   :  { %v125_v16 = vadd.f32 %v296_v14, %v124_v15 }
  0x9d   :  { %v128_v17 = vmax.f32 %v125_v16, 0.0 }
  0x9f   :  { %v129_v18 = vpack.c.bf16 %v128_v17, %v128_v17 }
  0xa1   :  { %206 = vmatmul.bf16.vlgmr.msra.gmra.mxu1 %v129_v18 }
  0xa2   :  { %v126_v19 = vpop.f32.mrf.mxu0 }
 0x11e   :  { %v207_v21 = vpop.f32.mrf.mxu1 }
 0x11f   :  { %v208_v22 = vadd.f32 %v297_v20, %v207_v21 }
 0x121   :  { %v211_v24 = vmax.f32 %v208_v22, 0.0 }
 0x123   :  { %v216_v25 = vmul.f32 %v298_v23, %v211_v24 }
 0x125   :  { %217 = vadd.xlane.f32.xlu0 %v216_v25 }
 0x126   :  { %v209_v26 = vpop.f32.mrf.mxu1 }
 0x198   :  { %v218_v28 = vpop.xlane.xlu0 %217 }
 0x199   :  { %v221_v29 = vadd.f32 %v220_v27, %v218_v28 }
 0x19b   :  { %223 = vst.msk [vmem:[%s451_s7] sm:$0xff] %vm222_vm1, %v221_v29 }
 0x19c   :  { %228 = vsyncpa [#allocation4], 1 }
 0x19d   :  { %229 = vsyncpa [#allocation6], 1 }

</bundles_post_ra>
